<compile_context>
chip_gen: v7x
topology: tpu7x:2x2x1
jax: 0.10.0
libtpu: 0.0.40
codegen_flags: <defaults>
</compile_context>

<pallas_src>
import functools

import jax
import jax.numpy as jnp
from jax.experimental import pallas as pl
from jax.experimental.pallas import tpu as pltpu


def _round_up(x, m):
    return (x + m - 1) // m * m


def _conv_stats_kernel(cols_ref, w_ref, part_ref):
    """Pass 1: conv tile -> per-channel sum / sum-of-squares for this tile.

    cols_ref: (TR, K)        im2col rows tile
    w_ref:    (K, Cout_p)    resident weight matrix
    part_ref: (1, 8, Cout_p) row 0 = sum, row 1 = sum of squares, rest zero
    """
    conv = jnp.dot(cols_ref[...], w_ref[...],
                   preferred_element_type=jnp.float32)          # (TR, Cout_p)
    s = jnp.sum(conv, axis=0, keepdims=True)                    # (1, Cout_p)
    sq = jnp.sum(conv * conv, axis=0, keepdims=True)            # (1, Cout_p)
    fill = jnp.zeros((6, conv.shape[1]), jnp.float32)
    part_ref[...] = jnp.concatenate([s, sq, fill], axis=0)[None]


def _conv_bn_silu_kernel(cols_ref, w_ref, scale_ref, shift_ref, o_ref):
    """Pass 2: conv tile -> folded BN affine (scale*x + shift) -> SiLU."""
    conv = jnp.dot(cols_ref[...], w_ref[...],
                   preferred_element_type=jnp.float32)          # (TR, Cout_p)
    y = conv * scale_ref[...] + shift_ref[...]
    o_ref[...] = (y * jax.nn.sigmoid(y)).astype(o_ref.dtype)


@functools.partial(jax.jit,
                   static_argnames=("stride", "padding", "groups", "eps",
                                    "row_tile"))
def cnn_block_forward(x_nchw, weight, gamma, beta, *, stride, padding,
                      groups=1, eps=1e-5, row_tile=256):
    """x_nchw: (N, Cin, H, W); weight: (Cout, Cin//groups, KH, KW) (PyTorch)."""
    N, Cin, H, W = x_nchw.shape
    Cout, Cin_g, KH, KW = weight.shape
    assert Cin_g * groups == Cin and Cout % groups == 0
    Cout_g = Cout // groups

    H_out = (H + 2 * padding - KH) // stride + 1
    W_out = (W + 2 * padding - KW) // stride + 1
    rows = N * H_out * W_out
    Kd = KH * KW * Cin
    Cout_p = _round_up(Cout, 128)           # lane-dense output channels

    TR = min(row_tile, _round_up(rows, 8))  # row tile (multiple of 8 sublanes)
    rows_p = _round_up(rows, TR)
    T = rows_p // TR

    # ---- glue: im2col columns (channels innermost, tap-major) -------------
    # TODO(synk): the pad/transpose/im2col expansion (~KH*KW x activation
    # bytes) is still a separate XLA materialization; an in-kernel halo /
    # patch extraction with manual DMAs would remove that extra HBM traffic.
    x_nhwc = jnp.transpose(x_nchw, (0, 2, 3, 1))
    x_pad = jnp.pad(x_nhwc,
                    ((0, 0), (padding, padding), (padding, padding), (0, 0)))
    taps = []
    for kh in range(KH):
        for kw in range(KW):
            taps.append(
                x_pad[:, kh:kh + (H_out - 1) * stride + 1:stride,
                         kw:kw + (W_out - 1) * stride + 1:stride, :])
    cols = jnp.concatenate(taps, axis=-1).reshape(rows, Kd)
    cols = jnp.pad(cols, ((0, rows_p - rows), (0, 0)))   # zero rows: no effect
                                                         # on sums / sliced off

    # ---- weight as (K, Cout_p) matrix (block-diagonal over groups) --------
    w_t = jnp.transpose(weight, (2, 3, 1, 0)).astype(cols.dtype)  # KH,KW,Cin_g,Cout
    if groups == 1:
        w_full = w_t
    else:
        # TODO(synk): grouped/depthwise conv is expressed as a block-diagonal
        # dense matmul (correct, but wastes MXU work for many groups); a
        # per-group / VPU path would be the next optimization.
        w_full = jnp.zeros((KH, KW, Cin, Cout), cols.dtype)
        for g in range(groups):
            w_full = w_full.at[:, :, g * Cin_g:(g + 1) * Cin_g,
                               g * Cout_g:(g + 1) * Cout_g].set(
                w_t[:, :, :, g * Cout_g:(g + 1) * Cout_g])
    w2d = jnp.pad(w_full.reshape(Kd, Cout), ((0, 0), (0, Cout_p - Cout)))

    cparams = pltpu.CompilerParams(
        dimension_semantics=("parallel",),
        vmem_limit_bytes=32 * 1024 * 1024)   # explicit budget (v7x-safe)

    itemsize = jnp.dtype(cols.dtype).itemsize
    mm_flops = 2 * rows_p * Kd * Cout_p

    # ---- pass 1: per-tile per-channel sum / sum-of-squares ----------------
    part = pl.pallas_call(
        _conv_stats_kernel,
        out_shape=jax.ShapeDtypeStruct((T, 8, Cout_p), jnp.float32),
        grid=(T,),
        in_specs=[pl.BlockSpec((TR, Kd), lambda t: (t, 0)),
                  pl.BlockSpec((Kd, Cout_p), lambda t: (0, 0))],
        out_specs=pl.BlockSpec((1, 8, Cout_p), lambda t: (t, 0, 0)),
        compiler_params=cparams,
        cost_estimate=pl.CostEstimate(
            flops=int(mm_flops + 3 * rows_p * Cout_p),
            transcendentals=0,
            bytes_accessed=int((rows_p * Kd + Kd * Cout_p) * itemsize
                               + T * 8 * Cout_p * 4)),
    )(cols, w2d)

    # ---- tiny host-side fold: BN batch stats + affine -> scale / shift ----
    total = jnp.sum(part, axis=0)                       # (8, Cout_p)
    mean = total[0] / rows
    var = jnp.maximum(total[1] / rows - mean * mean, 0.0)   # biased variance
    rstd = jax.lax.rsqrt(var + eps)
    gamma_p = jnp.pad(gamma.astype(jnp.float32), (0, Cout_p - Cout))
    beta_p = jnp.pad(beta.astype(jnp.float32), (0, Cout_p - Cout))
    scale = (gamma_p * rstd).reshape(1, Cout_p)
    shift = (beta_p - mean * gamma_p * rstd).reshape(1, Cout_p)

    # ---- pass 2: conv (recomputed) -> scale*x + shift -> SiLU -------------
    out_p = pl.pallas_call(
        _conv_bn_silu_kernel,
        out_shape=jax.ShapeDtypeStruct((rows_p, Cout_p), x_nchw.dtype),
        grid=(T,),
        in_specs=[pl.BlockSpec((TR, Kd), lambda t: (t, 0)),
                  pl.BlockSpec((Kd, Cout_p), lambda t: (0, 0)),
                  pl.BlockSpec((1, Cout_p), lambda t: (0, 0)),
                  pl.BlockSpec((1, Cout_p), lambda t: (0, 0))],
        out_specs=pl.BlockSpec((TR, Cout_p), lambda t: (t, 0)),
        compiler_params=cparams,
        cost_estimate=pl.CostEstimate(
            flops=int(mm_flops + 4 * rows_p * Cout_p),
            transcendentals=int(rows_p * Cout_p),
            bytes_accessed=int((rows_p * Kd + Kd * Cout_p + 2 * Cout_p
                                + rows_p * Cout_p) * itemsize)),
    )(cols, w2d, scale, shift)

    out = out_p[:rows, :Cout].reshape(N, H_out, W_out, Cout)
    return jnp.transpose(out, (0, 3, 1, 2))              # back to NCHW


def _reference(x_nchw, weight, gamma, beta, *, stride, padding, groups=1,
               eps=1e-5):
    """Pure-JAX reference mirroring the PyTorch forward (training-mode BN)."""
    conv = jax.lax.conv_general_dilated(
        x_nchw.astype(jnp.float32), weight.astype(jnp.float32),
        window_strides=(stride, stride),
        padding=[(padding, padding), (padding, padding)],
        dimension_numbers=('NCHW', 'OIHW', 'NCHW'),
        feature_group_count=groups)
    mean = jnp.mean(conv, axis=(0, 2, 3), keepdims=True)
    var = jnp.mean((conv - mean) ** 2, axis=(0, 2, 3), keepdims=True)
    xn = (conv - mean) * jax.lax.rsqrt(var + eps)
    y = xn * gamma.reshape(1, -1, 1, 1) + beta.reshape(1, -1, 1, 1)
    return y * jax.nn.sigmoid(y)


if __name__ == "__main__":
    # CNNBlock(in_channels=4, out_channels=8, kernel_size=3, stride=1,
    #          padding=1, groups=1)
    N, Cin, H, W = 2, 4, 16, 16
    Cout, K, stride, padding, groups = 8, 3, 1, 1, 1

    key = jax.random.PRNGKey(0)
    kx, kw = jax.random.split(key)

    x = jax.random.normal(kx, (N, Cin, H, W), dtype=jnp.float32)
    # nn.Conv2d weight shape: (out_channels, in_channels // groups, KH, KW)
    weight = jax.random.normal(kw, (Cout, Cin // groups, K, K),
                               dtype=jnp.float32) * 0.1
    # nn.BatchNorm2d init: gamma = 1, beta = 0
    gamma = jnp.ones((Cout,), jnp.float32)
    beta = jnp.zeros((Cout,), jnp.float32)

    out = cnn_block_forward(x, weight, gamma, beta,
                            stride=stride, padding=padding, groups=groups)
    out = jax.block_until_ready(out)

    ref = _reference(x, weight, gamma, beta,
                     stride=stride, padding=padding, groups=groups)

    assert out.shape == (N, Cout, H, W), out.shape
    assert jnp.allclose(out, ref, rtol=1e-4, atol=1e-4), \
        float(jnp.max(jnp.abs(out - ref)))

    print("KERNEL_OK")
</pallas_src>

<mosaic_0001>
module attributes {stable_mosaic.version = 11 : i64} {
  func.func @_conv_stats_kernel(%arg0: i32, %arg1: memref<256x36xf32, #tpu.memory_space<vmem>>, %arg2: memref<36x128xf32, #tpu.memory_space<vmem>>, %arg3: memref<1x8x128xf32, #tpu.memory_space<vmem>>) attributes {dimension_semantics = [#tpu.dimension_semantics<parallel>], iteration_bounds = array<i64: 2>, scalar_prefetch = 0 : i64, scratch_operands = 0 : i64, tpu.core_type = #tpu.core_type<tc>, window_params = [{transform_indices = @transform_0, window_bounds = array<i64: 256, 36>}, {pipeline_mode = #tpu.pipeline_mode<synchronous>, transform_indices = @transform_1, window_bounds = array<i64: 36, 128>}, {transform_indices = @transform_2, window_bounds = array<i64: 1, 8, 128>}]} {
    %c0 = arith.constant 0 : index
    %c0_0 = arith.constant 0 : index
    %0 = vector.load %arg1[%c0, %c0_0] : memref<256x36xf32, #tpu.memory_space<vmem>>, vector<256x36xf32>
    %c0_1 = arith.constant 0 : index
    %c0_2 = arith.constant 0 : index
    %1 = vector.load %arg2[%c0_1, %c0_2] : memref<36x128xf32, #tpu.memory_space<vmem>>, vector<36x128xf32>
    %cst = arith.constant dense<0.000000e+00> : vector<256x128xf32>
    %2 = tpu.matmul %0, %1, %cst {dimension_numbers = #tpu.dot_dimension_numbers<[1], [0], [0], [1], [0, 0, 1, 1], [], []>} : vector<256x36xf32>, vector<36x128xf32>, vector<256x128xf32> -> vector<256x128xf32>
    %cst_3 = arith.constant dense<0.000000e+00> : vector<128xf32>
    %3 = vector.multi_reduction <add>, %2, %cst_3 [0] : vector<256x128xf32> to vector<128xf32>
    %4 = vector.shape_cast %3 : vector<128xf32> to vector<1x128xf32>
    %5 = arith.mulf %2, %2 : vector<256x128xf32>
    %cst_4 = arith.constant dense<0.000000e+00> : vector<128xf32>
    %6 = vector.multi_reduction <add>, %5, %cst_4 [0] : vector<256x128xf32> to vector<128xf32>
    %7 = vector.shape_cast %6 : vector<128xf32> to vector<1x128xf32>
    %cst_5 = arith.constant 0.000000e+00 : f32
    %8 = vector.broadcast %cst_5 : f32 to vector<6x128xf32>
    %9 = tpu.concatenate %4, %7, %8 in 0 : vector<1x128xf32>, vector<1x128xf32>, vector<6x128xf32> -> vector<8x128xf32>
    %10 = vector.shape_cast %9 : vector<8x128xf32> to vector<1x8x128xf32>
    %c0_6 = arith.constant 0 : index
    %c0_7 = arith.constant 0 : index
    %c0_8 = arith.constant 0 : index
    %11 = vector.load %arg3[%c0_6, %c0_7, %c0_8] : memref<1x8x128xf32, #tpu.memory_space<vmem>>, vector<1x8x128xf32>
    tpu.vector_store %arg3[%c0_6, %c0_7, %c0_8], %10 {strides = array<i32>} : memref<1x8x128xf32, #tpu.memory_space<vmem>>, vector<1x8x128xf32>,
    return
  }
  func.func @transform_0(%arg0: i32) -> (i32, i32) {
    %c0_i32 = arith.constant 0 : i32
    %c0_i32_0 = arith.constant 0 : i32
    return %arg0, %c0_i32 : i32, i32
  }
  func.func @transform_1(%arg0: i32) -> (i32, i32) {
    %c0_i32 = arith.constant 0 : i32
    %c0_i32_0 = arith.constant 0 : i32
    %c0_i32_1 = arith.constant 0 : i32
    return %c0_i32, %c0_i32_0 : i32, i32
  }
  func.func @transform_2(%arg0: i32) -> (i32, i32, i32) {
    %c0_i32 = arith.constant 0 : i32
    %c0_i32_0 = arith.constant 0 : i32
    %c0_i32_1 = arith.constant 0 : i32
    return %arg0, %c0_i32, %c0_i32_0 : i32, i32, i32
  }
}

module attributes {stable_mosaic.version = 11 : i64} {
  func.func @_conv_bn_silu_kernel(%arg0: i32, %arg1: memref<256x36xf32, #tpu.memory_space<vmem>>, %arg2: memref<36x128xf32, #tpu.memory_space<vmem>>, %arg3: memref<1x128xf32, #tpu.memory_space<vmem>>, %arg4: memref<1x128xf32, #tpu.memory_space<vmem>>, %arg5: memref<256x128xf32, #tpu.memory_space<vmem>>) attributes {dimension_semantics = [#tpu.dimension_semantics<parallel>], iteration_bounds = array<i64: 2>, scalar_prefetch = 0 : i64, scratch_operands = 0 : i64, tpu.core_type = #tpu.core_type<tc>, window_params = [{transform_indices = @transform_0, window_bounds = array<i64: 256, 36>}, {pipeline_mode = #tpu.pipeline_mode<synchronous>, transform_indices = @transform_1, window_bounds = array<i64: 36, 128>}, {pipeline_mode = #tpu.pipeline_mode<synchronous>, transform_indices = @transform_2, window_bounds = array<i64: 1, 128>}, {pipeline_mode = #tpu.pipeline_mode<synchronous>, transform_indices = @transform_3, window_bounds = array<i64: 1, 128>}, {transform_indices = @transform_4, window_bounds = array<i64: 256, 128>}]} {
    %c0 = arith.constant 0 : index
    %c0_0 = arith.constant 0 : index
    %0 = vector.load %arg1[%c0, %c0_0] : memref<256x36xf32, #tpu.memory_space<vmem>>, vector<256x36xf32>
    %c0_1 = arith.constant 0 : index
    %c0_2 = arith.constant 0 : index
    %1 = vector.load %arg2[%c0_1, %c0_2] : memref<36x128xf32, #tpu.memory_space<vmem>>, vector<36x128xf32>
    %cst = arith.constant dense<0.000000e+00> : vector<256x128xf32>
    %2 = tpu.matmul %0, %1, %cst {dimension_numbers = #tpu.dot_dimension_numbers<[1], [0], [0], [1], [0, 0, 1, 1], [], []>} : vector<256x36xf32>, vector<36x128xf32>, vector<256x128xf32> -> vector<256x128xf32>
    %c0_3 = arith.constant 0 : index
    %c0_4 = arith.constant 0 : index
    %3 = vector.load %arg3[%c0_3, %c0_4] : memref<1x128xf32, #tpu.memory_space<vmem>>, vector<1x128xf32>
    %4 = vector.broadcast %3 : vector<1x128xf32> to vector<256x128xf32>
    %5 = arith.mulf %2, %4 : vector<256x128xf32>
    %c0_5 = arith.constant 0 : index
    %c0_6 = arith.constant 0 : index
    %6 = vector.load %arg4[%c0_5, %c0_6] : memref<1x128xf32, #tpu.memory_space<vmem>>, vector<1x128xf32>
    %7 = vector.broadcast %6 : vector<1x128xf32> to vector<256x128xf32>
    %8 = arith.addf %5, %7 : vector<256x128xf32>
    %9 = arith.negf %8 : vector<256x128xf32>
    %10 = math.exp %9 : vector<256x128xf32>
    %cst_7 = arith.constant 1.000000e+00 : f32
    %11 = vector.broadcast %cst_7 : f32 to vector<256x128xf32>
    %12 = arith.addf %11, %10 : vector<256x128xf32>
    %13 = arith.divf %11, %12 : vector<256x128xf32>
    %14 = arith.mulf %8, %13 : vector<256x128xf32>
    %c0_8 = arith.constant 0 : index
    %c0_9 = arith.constant 0 : index
    %15 = vector.load %arg5[%c0_8, %c0_9] : memref<256x128xf32, #tpu.memory_space<vmem>>, vector<256x128xf32>
    tpu.vector_store %arg5[%c0_8, %c0_9], %14 {strides = array<i32>} : memref<256x128xf32, #tpu.memory_space<vmem>>, vector<256x128xf32>,
    return
  }
  func.func @transform_0(%arg0: i32) -> (i32, i32) {
    %c0_i32 = arith.constant 0 : i32
    %c0_i32_0 = arith.constant 0 : i32
    return %arg0, %c0_i32 : i32, i32
  }
  func.func @transform_1(%arg0: i32) -> (i32, i32) {
    %c0_i32 = arith.constant 0 : i32
    %c0_i32_0 = arith.constant 0 : i32
    %c0_i32_1 = arith.constant 0 : i32
    return %c0_i32, %c0_i32_0 : i32, i32
  }
  func.func @transform_2(%arg0: i32) -> (i32, i32) {
    %c0_i32 = arith.constant 0 : i32
    %c0_i32_0 = arith.constant 0 : i32
    %c0_i32_1 = arith.constant 0 : i32
    return %c0_i32, %c0_i32_0 : i32, i32
  }
  func.func @transform_3(%arg0: i32) -> (i32, i32) {
    %c0_i32 = arith.constant 0 : i32
    %c0_i32_0 = arith.constant 0 : i32
    %c0_i32_1 = arith.constant 0 : i32
    return %c0_i32, %c0_i32_0 : i32, i32
  }
  func.func @transform_4(%arg0: i32) -> (i32, i32) {
    %c0_i32 = arith.constant 0 : i32
    %c0_i32_0 = arith.constant 0 : i32
    return %arg0, %c0_i32 : i32, i32
  }
}

</mosaic_0001>

<bundles_post_ra>
// kernel: cnn_block_forward.2
= control target key start
LH: loop header
LB: loop body
LE: loop exit
PB: predicated region body
PF: predicated region fallthrough
CT: control target
= control target key end

     0   :  { %s854_s9 = smov 0   ;;  %s1002_s0 = inlined_call_operand.vmem [shape: f32[512,36], index: 0, kind: input, shape index: {}]   ;;  %s1003_s1 = inlined_call_operand.vmem [shape: f32[36,128], index: 1, kind: input, shape index: {}]   ;;  %s1004_s2 = inlined_call_operand.vmem [shape: f32[2,8,128], index: 2, kind: output, shape index: {}]  }
   0x1 LB: > { %s860_s10 = sadd.s32 4294967295, %s837_s9   ;;  %p675_p0 = scmp.ge.s32.totalorder %s837_s9, 1  ;;  %s837_s9 = sphi %s854_s9, %s12_s9  }
   0x2   : > { %p113_p1 = scmp.lt.s32.totalorder %s837_s9, 3 }
   0x4   : > { %p114_p2 = pnand %p675_p0, %p113_p1 }
   0x5   : > { %v176_v0 = vld [vmem:[%s1003_s1] sm:$0xff] (!%p114_p2)  ;;  %v177_v1 = vld [vmem:[%s1003_s1 + $0x8] sm:$0xff] (!%p114_p2)  ;;  %v178_v2 = vld [vmem:[%s1003_s1 + $0x10] sm:$0xff] (!%p114_p2)  ;;  %s676_s17 = sshll.u32 (!%p114_p2), %s860_s10, 5  ;;  %vm181_vm0 = vcmask (!%p114_p2), 293888   ;;  %vm278_vm1 = vcmask (!%p114_p2), 1043456  }
   0x6   : > { %117 = sbr.rel (%p114_p2) target bundleno = 312 (0x138), region = 28  ;;  %v809_v3 = vpack.c.bf16 (!%p114_p2), %v177_v1, %v176_v0  ;;  %v179_v4 = vld [vmem:[%s1003_s1 + $0x18] sm:$0xff] (!%p114_p2)  ;;  %p135_p3 = scmp.lt.s32.totalorder (!%p114_p2), %s676_s17, 63  ;;  %v180_v6 = vld [vmem:[%s1003_s1 + $0x20] sm:$0xf] (!%p114_p2)  ;;  %vm613_vm2 = vcmask (!%p114_p2), 1040384  }
   0x7   : > { %v813_v5 = vpack.c.bf16 (!%p114_p2), %v179_v4, %v178_v2  ;;  %p140_p4 = scmp.lt.s32.totalorder (!%p114_p2), %s860_s10, 1  ;;  %vm615_vm3 = vcmask (!%p114_p2), 1041408  }
   0x8   : > { %810 = vmatprep.subr.bf16.mxu0 (!%p114_p2), %v809_v3  ;;  %817 = vmatprep.subr.bf16.mxu1 (!%p114_p2), %v809_v3 }
   0x9   : > { %812 = vmatpush3.bf16.msra.mxu0 (!%p114_p2), %v809_v3  ;;  %820 = vmatpush3.bf16.msra.mxu1 (!%p114_p2), %v809_v3 }
   0xa   : > { %814 = vmatprep.subr.bf16.mxu0 (!%p114_p2), %v813_v5  ;;  %818 = vmatprep.subr.bf16.mxu1 (!%p114_p2), %v813_v5 }
   0xd   : > { %s1006_s17 = smov (!%p135_p3, %s676_s17), 63  ;;  %816 = vmatpush3.bf16.msra.mxu0 %v813_v5  ;;  %821 = vmatpush3.bf16.msra.mxu1 %v813_v5  ;;  %s1008_s10 = smov (!%p140_p4, %s860_s10), 1 }
   0xe   : > { %s677_s20 = sshll.u32 %s1006_s17, 3  ;;  %759 = vmatprep.subr.msk.mxu0 %vm278_vm1, %v180_v6  ;;  %819 = vmatprep.subr.msk.mxu1 %vm278_vm1, %v180_v6  ;;  %s678_s26 = sshll.u32 %s1008_s10, 3 }
   0xf   : > { %s883_s25 = scalar_lea.vmem %s1002_s0, %s677_s20  ;;  %s143_s29 = scalar_lea.vmem %s1004_s2, %s678_s26 }
  0x10   : > { %v144_v7 = vld [vmem:[%s883_s25] sm:$0xff]  ;;  %v145_v8 = vld [vmem:[%s883_s25 + $0x8] sm:$0xff]  ;;  %v146_v9 = vld [vmem:[%s883_s25 + $0x10] sm:$0xff] }
  0x11   : > { %761 = vmatprep.mubr.msk.f32.mxu0 %vm181_vm0, %v144_v7  ;;  %760 = vmatpush3.msk.msra.mxu0 %vm278_vm1, %v180_v6  ;;  %v160_v10 = vld [vmem:[%s883_s25 + $0x80] sm:$0xff]  ;;  %v161_v11 = vld [vmem:[%s883_s25 + $0x88] sm:$0xff]  ;;  %v162_v12 = vld [vmem:[%s883_s25 + $0x90] sm:$0xff] }
  0x12   : > { %762 = vmatmul.mubr.msk.f32.vlgmr.msra.gmra.mrb[0].mxu0 %vm181_vm0, %v145_v8  ;;  %822 = vmatpush3.msk.msra.mxu1 %vm278_vm1, %v180_v6  ;;  %v147_v13 = vld [vmem:[%s883_s25 + $0x18] sm:$0xff]  ;;  %v148_v14 = vld [vmem:[%s883_s25 + $0x20] sm:$0xff]  ;;  %v149_v17 = vld [vmem:[%s883_s25 + $0x28] sm:$0xff] }
  0x13   : > { %764 = vmatprep.mubr.msk.f32.mxu0 %vm181_vm0, %v146_v9  ;;  %785 = vmatprep.mubr.msk.f32.mxu1 %vm181_vm0, %v160_v10  ;;  %v163_v15 = vld [vmem:[%s883_s25 + $0x98] sm:$0xff]  ;;  %v164_v16 = vld [vmem:[%s883_s25 + $0xa0] sm:$0xff]  ;;  %v150_v18 = vld [vmem:[%s883_s25 + $0x30] sm:$0xff] }
  0x14   : > { %786 = vmatmul.mubr.msk.f32.vlgmr.msra.gmra.mrb[0].mxu1 %vm181_vm0, %v161_v11  ;;  %v165_v19 = vld [vmem:[%s883_s25 + $0xa8] sm:$0xff]  ;;  %v166_v20 = vld [vmem:[%s883_s25 + $0xb0] sm:$0xff]  ;;  %v151_v21 = vld [vmem:[%s883_s25 + $0x38] sm:$0xff] }
  0x15   : > { %788 = vmatprep.mubr.msk.f32.mxu1 %vm181_vm0, %v162_v12  ;;  %v152_v22 = vld [vmem:[%s883_s25 + $0x40] sm:$0xff]  ;;  %v167_v23 = vld [vmem:[%s883_s25 + $0xb8] sm:$0xff]  ;;  %v153_v25 = vld [vmem:[%s883_s25 + $0x48] sm:$0xff] }
  0x16   : > { %765 = vmatmul.mubr.msk.f32.gmra.mrb[2].mxu0 %vm181_vm0, %v147_v13  ;;  %v168_v24 = vld [vmem:[%s883_s25 + $0xc0] sm:$0xff]  ;;  %v154_v26 = vld [vmem:[%s883_s25 + $0x50] sm:$0xff]  ;;  %v169_v27 = vld [vmem:[%s883_s25 + $0xc8] sm:$0xff] }
  0x17   : > { %767 = vmatprep.mubr.msk.f32.mxu0 %vm181_vm0, %v148_v14  ;;  %v170_v28 = vld [vmem:[%s883_s25 + $0xd0] sm:$0xff]  ;;  %v155_v29 = vld [vmem:[%s883_s25 + $0x58] sm:$0xff]  ;;  %v156_v30 = vld [vmem:[%s883_s25 + $0x60] sm:$0xff] }
  0x18   : > { %789 = vmatmul.mubr.msk.f32.gmra.mrb[2].mxu1 %vm181_vm0, %v163_v15  ;;  %v171_v31 = vld [vmem:[%s883_s25 + $0xd8] sm:$0xff]  ;;  %v172_v32 = vld [vmem:[%s883_s25 + $0xe0] sm:$0xff]  ;;  %v157_v33 = vld [vmem:[%s883_s25 + $0x68] sm:$0xff] }
  0x19   : > { %791 = vmatprep.mubr.msk.f32.mxu1 %vm181_vm0, %v164_v16  ;;  %v158_v34 = vld [vmem:[%s883_s25 + $0x70] sm:$0xff]  ;;  %v173_v35 = vld [vmem:[%s883_s25 + $0xe8] sm:$0xff]  ;;  %v159_v37 = vld [vmem:[%s883_s25 + $0x78] sm:$0xff] }
  0x1a   : > { %768 = vmatmul.mubr.msk.f32.gmra.mrb[4].mxu0 %vm181_vm0, %v149_v17  ;;  %v174_v36 = vld [vmem:[%s883_s25 + $0xf0] sm:$0xff]  ;;  %v175_v38 = vld [vmem:[%s883_s25 + $0xf8] sm:$0xff] }
  0x1b   : > { %770 = vmatprep.mubr.msk.f32.mxu0 %vm181_vm0, %v150_v18 }
  0x1c   : > { %792 = vmatmul.mubr.msk.f32.gmra.mrb[4].mxu1 %vm181_vm0, %v165_v19 }
  0x1d   : > { %794 = vmatprep.mubr.msk.f32.mxu1 %vm181_vm0, %v166_v20 }
  0x1e   : > { %771 = vmatmul.mubr.msk.f32.gmra.mrb[6].mxu0 %vm181_vm0, %v151_v21 }
  0x1f   : > { %773 = vmatprep.mubr.msk.f32.mxu0 %vm181_vm0, %v152_v22 }
  0x20   : > { %795 = vmatmul.mubr.msk.f32.gmra.mrb[6].mxu1 %vm181_vm0, %v167_v23 }
  0x21   : > { %797 = vmatprep.mubr.msk.f32.mxu1 %vm181_vm0, %v168_v24 }
  0x22   : > { %774 = vmatmul.mubr.msk.f32.gmra.mrb[8].mxu0 %vm181_vm0, %v153_v25 }
  0x23   : > { %776 = vmatprep.mubr.msk.f32.mxu0 %vm181_vm0, %v154_v26 }
  0x24   : > { %798 = vmatmul.mubr.msk.f32.gmra.mrb[8].mxu1 %vm181_vm0, %v169_v27 }
  0x25   : > { %800 = vmatprep.mubr.msk.f32.mxu1 %vm181_vm0, %v170_v28 }
  0x26   : > { %777 = vmatmul.mubr.msk.f32.gmra.mrb[10].mxu0 %vm181_vm0, %v155_v29 }
  0x27   : > { %779 = vmatprep.mubr.msk.f32.mxu0 %vm181_vm0, %v156_v30 }
  0x28   : > { %801 = vmatmul.mubr.msk.f32.gmra.mrb[10].mxu1 %vm181_vm0, %v171_v31 }
  0x29   : > { %803 = vmatprep.mubr.msk.f32.mxu1 %vm181_vm0, %v172_v32 }
  0x2a   : > { %780 = vmatmul.mubr.msk.f32.gmra.mrb[12].mxu0 %vm181_vm0, %v157_v33 }
  0x2b   : > { %782 = vmatprep.mubr.msk.f32.mxu0 %vm181_vm0, %v158_v34 }
  0x2c   : > { %804 = vmatmul.mubr.msk.f32.gmra.mrb[12].mxu1 %vm181_vm0, %v173_v35 }
  0x2d   : > { %806 = vmatprep.mubr.msk.f32.mxu1 %vm181_vm0, %v174_v36 }
  0x2e   : > { %783 = vmatmul.mubr.msk.f32.gmra.mrb[14].mxu0 %vm181_vm0, %v159_v37 }
  0x30   : > { %807 = vmatmul.mubr.msk.f32.gmra.mrb[14].mxu1 %vm181_vm0, %v175_v38 }
  0xe5   : > { %v763_v39 = vpop.f32.mrb[0].mxu0 }
  0xe6   : > { %v545_v40 = vmul.f32 %v763_v39, %v763_v39  ;;  %v348_v41 = vpop.f32.mrb[1].mxu0 }
  0xe7   : > { %v507_v42 = vadd.f32 %v763_v39, %v348_v41  ;;  %v544_v43 = vmul.f32 %v348_v41, %v348_v41  ;;  %v949_v44 = vpop.f32.mrb[0].mxu1 }
  0xe8   : > { %v951_v45 = vpop.f32.mrb[1].mxu1 }
  0xe9   : > { %v576_v46 = vadd.f32 %v545_v40, %v544_v43  ;;  %v766_v47 = vpop.f32.mrb[2].mxu0 }
  0xea   : > { %v358_v48 = vpop.f32.mrb[3].mxu0  ;;  %v547_v53 = vmul.f32 %v766_v47, %v766_v47 }
  0xeb   : > { %v508_v49 = vadd.f32 %v507_v42, %v358_v48  ;;  %v546_v50 = vmul.f32 %v358_v48, %v358_v48  ;;  %v953_v51 = vpop.f32.mrb[2].mxu1 }
  0xec   : > { %v955_v52 = vpop.f32.mrb[3].mxu1 }
  0xed   : > { %v577_v54 = vadd.f32 %v576_v46, %v546_v50  ;;  %v769_v55 = vpop.f32.mrb[4].mxu0  ;;  %v509_v56 = vadd.f32 %v766_v47, %v508_v49 }
  0xee   : > { %v368_v57 = vpop.f32.mrb[5].mxu0  ;;  %v549_v63 = vmul.f32 %v769_v55, %v769_v55 }
  0xef   : > { %v510_v58 = vadd.f32 %v509_v56, %v368_v57  ;;  %v548_v59 = vmul.f32 %v368_v57, %v368_v57  ;;  %v578_v60 = vadd.f32 %v577_v54, %v547_v53  ;;  %v957_v61 = vpop.f32.mrb[4].mxu1  ;;  %v560_v56 = vmul.f32 %v951_v45, %v951_v45 }
  0xf0   : > { %v959_v62 = vpop.f32.mrb[5].mxu1 }
  0xf1   : > { %v579_v0 = vadd.f32 %v578_v60, %v548_v59  ;;  %v772_v1 = vpop.f32.mrb[6].mxu0  ;;  %v511_v2 = vadd.f32 %v769_v55, %v510_v58  ;;  %v561_v59 = vmul.f32 %v949_v44, %v949_v44 }
  0xf2   : > { %v378_v3 = vpop.f32.mrb[7].mxu0  ;;  %v551_v9 = vmul.f32 %v772_v1, %v772_v1 }
  0xf3   : > { %v512_v4 = vadd.f32 %v511_v2, %v378_v3  ;;  %v550_v5 = vmul.f32 %v378_v3, %v378_v3  ;;  %v580_v6 = vadd.f32 %v579_v0, %v549_v63  ;;  %v961_v7 = vpop.f32.mrb[6].mxu1  ;;  %v562_v0 = vmul.f32 %v955_v52, %v955_v52 }
  0xf4   : > { %v963_v8 = vpop.f32.mrb[7].mxu1  ;;  %v563_v3 = vmul.f32 %v953_v51, %v953_v51 }
  0xf5   : > { %v581_v10 = vadd.f32 %v580_v6, %v550_v5  ;;  %v775_v11 = vpop.f32.mrb[8].mxu0  ;;  %v513_v12 = vadd.f32 %v772_v1, %v512_v4 }
  0xf6   : > { %v388_v13 = vpop.f32.mrb[9].mxu0  ;;  %v553_v19 = vmul.f32 %v775_v11, %v775_v11 }
  0xf7   : > { %v514_v14 = vadd.f32 %v513_v12, %v388_v13  ;;  %v552_v15 = vmul.f32 %v388_v13, %v388_v13  ;;  %v582_v16 = vadd.f32 %v581_v10, %v551_v9  ;;  %v965_v17 = vpop.f32.mrb[8].mxu1 }
  0xf8   : > { %v468_v18 = vpop.f32.mrb[9].mxu1 }
  0xf9   : > { %v583_v20 = vadd.f32 %v582_v16, %v552_v15  ;;  %v778_v21 = vpop.f32.mrb[10].mxu0  ;;  %v515_v22 = vadd.f32 %v775_v11, %v514_v14 }
  0xfa   : > { %v398_v23 = vpop.f32.mrb[11].mxu0  ;;  %v555_v29 = vmul.f32 %v778_v21, %v778_v21 }
  0xfb   : > { %v516_v24 = vadd.f32 %v515_v22, %v398_v23  ;;  %v554_v25 = vmul.f32 %v398_v23, %v398_v23  ;;  %v584_v26 = vadd.f32 %v583_v20, %v553_v19  ;;  %v802_v27 = vpop.f32.mrb[10].mxu1  ;;  %v569_v20 = vmul.f32 %v965_v17, %v965_v17 }
  0xfc   : > { %v478_v28 = vpop.f32.mrb[11].mxu1 }
  0xfd   : > { %v585_v30 = vadd.f32 %v584_v26, %v554_v25  ;;  %v781_v31 = vpop.f32.mrb[12].mxu0  ;;  %v517_v32 = vadd.f32 %v778_v21, %v516_v24  ;;  %v570_v22 = vmul.f32 %v478_v28, %v478_v28 }
  0xfe   : > { %v408_v33 = vpop.f32.mrb[13].mxu0  ;;  %v557_v39 = vmul.f32 %v781_v31, %v781_v31 }
  0xff   : > { %v518_v34 = vadd.f32 %v517_v32, %v408_v33  ;;  %v556_v35 = vmul.f32 %v408_v33, %v408_v33  ;;  %v586_v36 = vadd.f32 %v585_v30, %v555_v29  ;;  %v805_v37 = vpop.f32.mrb[12].mxu1 }
 0x100   : > { %v488_v38 = vpop.f32.mrb[13].mxu1 }
 0x101   : > { %v587_v40 = vadd.f32 %v586_v36, %v556_v35  ;;  %v784_v41 = vpop.f32.mrb[14].mxu0  ;;  %v519_v42 = vadd.f32 %v781_v31, %v518_v34  ;;  %v572_v29 = vmul.f32 %v488_v38, %v488_v38 }
 0x102   : > { %v418_v43 = vpop.f32.mrb[15].mxu0  ;;  %v559_v53 = vmul.f32 %v784_v41, %v784_v41 }
 0x103   : > { %v520_v46 = vadd.f32 %v519_v42, %v418_v43  ;;  %v558_v47 = vmul.f32 %v418_v43, %v418_v43  ;;  %v588_v48 = vadd.f32 %v587_v40, %v557_v39  ;;  %v808_v49 = vpop.f32.mrb[14].mxu1 }
 0x104   : > { %v498_v50 = vpop.f32.mrb[15].mxu1  ;;  %v575_v36 = vmul.f32 %v808_v49, %v808_v49 }
 0x105   : > { %v521_v54 = vadd.f32 %v784_v41, %v520_v46  ;;  %v589_v55 = vadd.f32 %v588_v48, %v558_v47  ;;  %v574_v33 = vmul.f32 %v498_v50, %v498_v50 }
 0x107   : > { %v590_v57 = vadd.f32 %v589_v55, %v559_v53  ;;  %v522_v58 = vadd.f32 %v521_v54, %v951_v45  ;;  %v564_v45 = vmul.f32 %v959_v62, %v959_v62 }
 0x109   : > { %v591_v60 = vadd.f32 %v590_v57, %v560_v56  ;;  %v523_v63 = vadd.f32 %v949_v44, %v522_v58  ;;  %v565_v44 = vmul.f32 %v957_v61, %v957_v61 }
 0x10b   : > { %v524_v1 = vadd.f32 %v523_v63, %v955_v52  ;;  %v592_v2 = vadd.f32 %v591_v60, %v561_v59  ;;  %v566_v52 = vmul.f32 %v963_v8, %v963_v8 }
 0x10d   : > { %v593_v4 = vadd.f32 %v592_v2, %v562_v0  ;;  %v525_v5 = vadd.f32 %v953_v51, %v524_v1  ;;  %v567_v51 = vmul.f32 %v961_v7, %v961_v7 }
 0x10f   : > { %v526_v6 = vadd.f32 %v525_v5, %v959_v62  ;;  %v594_v9 = vadd.f32 %v593_v4, %v563_v3  ;;  %v568_v62 = vmul.f32 %v468_v18, %v468_v18 }
 0x111   : > { %v595_v10 = vadd.f32 %v594_v9, %v564_v45  ;;  %v527_v11 = vadd.f32 %v957_v61, %v526_v6 }
 0x113   : > { %v528_v12 = vadd.f32 %v527_v11, %v963_v8  ;;  %v596_v13 = vadd.f32 %v595_v10, %v565_v44  ;;  %v571_v8 = vmul.f32 %v802_v27, %v802_v27 }
 0x115   : > { %v597_v14 = vadd.f32 %v596_v13, %v566_v52  ;;  %v529_v15 = vadd.f32 %v961_v7, %v528_v12  ;;  %v573_v7 = vmul.f32 %v805_v37, %v805_v37 }
 0x117   : > { %v530_v16 = vadd.f32 %v529_v15, %v468_v18  ;;  %v598_v19 = vadd.f32 %v597_v14, %v567_v51 }
 0x119   : > { %v599_v21 = vadd.f32 %v598_v19, %v568_v62  ;;  %v531_v61 = vadd.f32 %v965_v17, %v530_v16 }
 0x11b   : > { %v532_v23 = vadd.f32 %v531_v61, %v478_v28  ;;  %v600_v24 = vadd.f32 %v599_v21, %v569_v20 }
 0x11d   : > { %v601_v25 = vadd.f32 %v600_v24, %v570_v22  ;;  %v533_v26 = vadd.f32 %v802_v27, %v532_v23 }
 0x11f   : > { %v534_v30 = vadd.f32 %v533_v26, %v488_v38  ;;  %v602_v31 = vadd.f32 %v601_v25, %v571_v8 }
 0x121   : > { %v603_v18 = vadd.f32 %v602_v31, %v572_v29  ;;  %v535_v32 = vadd.f32 %v805_v37, %v534_v30 }
 0x123   : > { %v536_v34 = vadd.f32 %v535_v32, %v498_v50  ;;  %v604_v35 = vadd.f32 %v603_v18, %v573_v7 }
 0x125   : > { %v537_v39 = vadd.f32 %v808_v49, %v536_v34  ;;  %v605_v17 = vadd.f32 %v604_v35, %v574_v33 }
 0x127   : > { %v538_v40 = vrot.slane %v537_v39, 4  ;;  %v606_v28 = vadd.f32 %v605_v17, %v575_v36 }
 0x129   : > { %v539_v41 = vadd.f32 %v538_v40, %v537_v39  ;;  %v607_v42 = vrot.slane %v606_v28, 4 }
 0x12b   : > { %v540_v43 = vrot.slane %v539_v41, 2  ;;  %v608_v27 = vadd.f32 %v607_v42, %v606_v28 }
 0x12d   : > { %v541_v38 = vadd.f32 %v540_v43, %v539_v41  ;;  %v609_v46 = vrot.slane %v608_v27, 2 }
 0x12f   : > { %v542_v47 = vrot.slane %v541_v38, 1  ;;  %v610_v48 = vadd.f32 %v609_v46, %v608_v27 }
 0x131   : > { %v611_v37 = vrot.slane %v610_v48, 1  ;;  %v543_v50 = vadd.f32 %v542_v47, %v541_v38 }
 0x133   : > { %v612_v53 = vadd.f32 %v611_v37, %v610_v48 }
 0x135   : > { %v614_v49 = vsel %vm613_vm2, %v543_v50, %v612_v53 }
 0x136   : > { %v616_v54 = vsel %vm615_vm3, %v614_v49, 0.0 }
 0x137   : > { %617 = vst [vmem:[%s143_s29] sm:$0xff] %v616_v54 }
 0x138 PF: > { %s12_s9 = sadd.s32 1, %s837_s9  }
 0x139   : > { %p9_p5 = scmp.ge.s32.totalorder %s12_s9, 4  }
 0x13b   :  { %11 = sbr.rel (!%p9_p5) target bundleno = 1 (0x1), region = 58 }

// kernel: cnn_block_forward.3
= control target key start
LH: loop header
LB: loop body
LE: loop exit
PB: predicated region body
PF: predicated region fallthrough
CT: control target
= control target key end

     0   :  { %s1310_s15 = smov 0   ;;  %s1676_s0 = inlined_call_operand.vmem [shape: f32[512,36], index: 0, kind: input, shape index: {}]   ;;  %s1677_s1 = inlined_call_operand.vmem [shape: f32[36,128], index: 1, kind: input, shape index: {}]   ;;  %s1678_s2 = inlined_call_operand.vmem [shape: f32[1,128], index: 2, kind: input, shape index: {}]   ;;  %s1679_s3 = inlined_call_operand.vmem [shape: f32[1,128], index: 3, kind: input, shape index: {}]   ;;  %s1680_s4 = inlined_call_operand.vmem [shape: f32[512,128], index: 4, kind: output, shape index: {}]  }
   0x1 LB: > { %s954_s16 = sadd.s32 4294967295, %s1283_s15   ;;  %p958_p0 = scmp.ge.s32.totalorder %s1283_s15, 1  ;;  %s1283_s15 = sphi %s1310_s15, %s14_s15  }
   0x2   : > { %p163_p1 = scmp.lt.s32.totalorder %s1283_s15, 3 }
   0x4   : > { %p164_p2 = pnand %p958_p0, %p163_p1 }
   0x5   : > { %v233_v0 = vld [vmem:[%s1677_s1] sm:$0xff] (!%p164_p2)  ;;  %v234_v1 = vld [vmem:[%s1677_s1 + $0x8] sm:$0xff] (!%p164_p2)  ;;  %v235_v2 = vld [vmem:[%s1677_s1 + $0x10] sm:$0xff] (!%p164_p2)  ;;  %s959_s23 = sshll.u32 (!%p164_p2), %s954_s16, 5  ;;  %vm335_vm0 = vcmask (!%p164_p2), 1043456   ;;  %vm238_vm1 = vcmask (!%p164_p2), 293888  }
   0x6   : > { %167 = sbr.rel (%p164_p2) target bundleno = 322 (0x142), region = 36  ;;  %v1127_v3 = vpack.c.bf16 (!%p164_p2), %v234_v1, %v233_v0  ;;  %v236_v4 = vld [vmem:[%s1677_s1 + $0x18] sm:$0xff] (!%p164_p2)  ;;  %p190_p3 = scmp.lt.s32.totalorder (!%p164_p2), %s959_s23, 63  ;;  %v237_v6 = vld [vmem:[%s1677_s1 + $0x20] sm:$0xf] (!%p164_p2) }
   0x7   : > { %v1131_v5 = vpack.c.bf16 (!%p164_p2), %v236_v4, %v235_v2  ;;  %v1414_v39 = vld [vmem:[%s1678_s2] ss:$0 sm:$0xff] (!%p164_p2) }
   0x8   : > { %1128 = vmatprep.subr.bf16.mxu0 (!%p164_p2), %v1127_v3  ;;  %1135 = vmatprep.subr.bf16.mxu1 (!%p164_p2), %v1127_v3  ;;  %v1419_v41 = vld [vmem:[%s1679_s3] ss:$0 sm:$0xff] (!%p164_p2) }
   0x9   : > { %1130 = vmatpush3.bf16.msra.mxu0 (!%p164_p2), %v1127_v3  ;;  %1138 = vmatpush3.bf16.msra.mxu1 (!%p164_p2), %v1127_v3 }
   0xa   : > { %1132 = vmatprep.subr.bf16.mxu0 (!%p164_p2), %v1131_v5  ;;  %1136 = vmatprep.subr.bf16.mxu1 (!%p164_p2), %v1131_v5 }
   0xd   : > { %s1682_s23 = smov (!%p190_p3, %s959_s23), 63  ;;  %1134 = vmatpush3.bf16.msra.mxu0 %v1131_v5  ;;  %1139 = vmatpush3.bf16.msra.mxu1 %v1131_v5 }
   0xe   : > { %s960_s26 = sshll.u32 %s1682_s23, 3  ;;  %1077 = vmatprep.subr.msk.mxu0 %vm335_vm0, %v237_v6  ;;  %1137 = vmatprep.subr.msk.mxu1 %vm335_vm0, %v237_v6 }
   0xf   : > { %s1341_s5 = scalar_lea.vmem %s1676_s0, %s960_s26  ;;  %s1532_s12 = scalar_lea.vmem %s1680_s4, %s960_s26 }
  0x10   : > { %v201_v7 = vld [vmem:[%s1341_s5] sm:$0xff]  ;;  %v202_v9 = vld [vmem:[%s1341_s5 + $0x8] sm:$0xff]  ;;  %v203_v11 = vld [vmem:[%s1341_s5 + $0x10] sm:$0xff] }
  0x11   : > { %v217_v8 = vld [vmem:[%s1341_s5 + $0x80] sm:$0xff]  ;;  %1079 = vmatprep.mubr.msk.f32.mxu0 %vm238_vm1, %v201_v7  ;;  %v218_v10 = vld [vmem:[%s1341_s5 + $0x88] sm:$0xff]  ;;  %v219_v12 = vld [vmem:[%s1341_s5 + $0x90] sm:$0xff]  ;;  %1078 = vmatpush3.msk.msra.mxu0 %vm335_vm0, %v237_v6 }
  0x12   : > { %1103 = vmatprep.mubr.msk.f32.mxu1 %vm238_vm1, %v217_v8  ;;  %1140 = vmatpush3.msk.msra.mxu1 %vm335_vm0, %v237_v6  ;;  %v204_v13 = vld [vmem:[%s1341_s5 + $0x18] sm:$0xff]  ;;  %v205_v15 = vld [vmem:[%s1341_s5 + $0x20] sm:$0xff]  ;;  %v206_v17 = vld [vmem:[%s1341_s5 + $0x28] sm:$0xff] }
  0x13   : > { %1080 = vmatmul.mubr.msk.f32.vlgmr.msra.gmra.mrb[0].mxu0 %vm238_vm1, %v202_v9  ;;  %1104 = vmatmul.mubr.msk.f32.vlgmr.msra.gmra.mrb[0].mxu1 %vm238_vm1, %v218_v10  ;;  %v220_v14 = vld [vmem:[%s1341_s5 + $0x98] sm:$0xff]  ;;  %v221_v16 = vld [vmem:[%s1341_s5 + $0xa0] sm:$0xff]  ;;  %v222_v18 = vld [vmem:[%s1341_s5 + $0xa8] sm:$0xff] }
  0x14   : > { %1082 = vmatprep.mubr.msk.f32.mxu0 %vm238_vm1, %v203_v11  ;;  %1106 = vmatprep.mubr.msk.f32.mxu1 %vm238_vm1, %v219_v12  ;;  %v207_v19 = vld [vmem:[%s1341_s5 + $0x30] sm:$0xff]  ;;  %v208_v21 = vld [vmem:[%s1341_s5 + $0x38] sm:$0xff]  ;;  %v209_v23 = vld [vmem:[%s1341_s5 + $0x40] sm:$0xff] }
  0x15   : > { %v223_v20 = vld [vmem:[%s1341_s5 + $0xb0] sm:$0xff]  ;;  %v224_v22 = vld [vmem:[%s1341_s5 + $0xb8] sm:$0xff]  ;;  %v225_v24 = vld [vmem:[%s1341_s5 + $0xc0] sm:$0xff] }
  0x16   : > { %v210_v25 = vld [vmem:[%s1341_s5 + $0x48] sm:$0xff]  ;;  %v211_v27 = vld [vmem:[%s1341_s5 + $0x50] sm:$0xff]  ;;  %v212_v29 = vld [vmem:[%s1341_s5 + $0x58] sm:$0xff] }
  0x17   : > { %1083 = vmatmul.mubr.msk.f32.gmra.mrb[2].mxu0 %vm238_vm1, %v204_v13  ;;  %1107 = vmatmul.mubr.msk.f32.gmra.mrb[2].mxu1 %vm238_vm1, %v220_v14  ;;  %v226_v26 = vld [vmem:[%s1341_s5 + $0xc8] sm:$0xff]  ;;  %v227_v28 = vld [vmem:[%s1341_s5 + $0xd0] sm:$0xff]  ;;  %v228_v30 = vld [vmem:[%s1341_s5 + $0xd8] sm:$0xff] }
  0x18   : > { %1085 = vmatprep.mubr.msk.f32.mxu0 %vm238_vm1, %v205_v15  ;;  %1109 = vmatprep.mubr.msk.f32.mxu1 %vm238_vm1, %v221_v16  ;;  %v213_v31 = vld [vmem:[%s1341_s5 + $0x60] sm:$0xff]  ;;  %v214_v33 = vld [vmem:[%s1341_s5 + $0x68] sm:$0xff]  ;;  %v215_v35 = vld [vmem:[%s1341_s5 + $0x70] sm:$0xff] }
  0x19   : > { %v229_v32 = vld [vmem:[%s1341_s5 + $0xe0] sm:$0xff]  ;;  %v230_v34 = vld [vmem:[%s1341_s5 + $0xe8] sm:$0xff]  ;;  %v231_v36 = vld [vmem:[%s1341_s5 + $0xf0] sm:$0xff] }
  0x1a   : > { %v216_v37 = vld [vmem:[%s1341_s5 + $0x78] sm:$0xff] }
  0x1b   : > { %1086 = vmatmul.mubr.msk.f32.gmra.mrb[4].mxu0 %vm238_vm1, %v206_v17  ;;  %1110 = vmatmul.mubr.msk.f32.gmra.mrb[4].mxu1 %vm238_vm1, %v222_v18  ;;  %v232_v38 = vld [vmem:[%s1341_s5 + $0xf8] sm:$0xff] }
  0x1c   : > { %1088 = vmatprep.mubr.msk.f32.mxu0 %vm238_vm1, %v207_v19  ;;  %1112 = vmatprep.mubr.msk.f32.mxu1 %vm238_vm1, %v223_v20 }
  0x1f   : > { %1089 = vmatmul.mubr.msk.f32.gmra.mrb[6].mxu0 %vm238_vm1, %v208_v21  ;;  %1113 = vmatmul.mubr.msk.f32.gmra.mrb[6].mxu1 %vm238_vm1, %v224_v22 }
  0x20   : > { %1091 = vmatprep.mubr.msk.f32.mxu0 %vm238_vm1, %v209_v23  ;;  %1115 = vmatprep.mubr.msk.f32.mxu1 %vm238_vm1, %v225_v24 }
  0x23   : > { %1092 = vmatmul.mubr.msk.f32.gmra.mrb[8].mxu0 %vm238_vm1, %v210_v25  ;;  %1116 = vmatmul.mubr.msk.f32.gmra.mrb[8].mxu1 %vm238_vm1, %v226_v26 }
  0x24   : > { %1094 = vmatprep.mubr.msk.f32.mxu0 %vm238_vm1, %v211_v27  ;;  %1118 = vmatprep.mubr.msk.f32.mxu1 %vm238_vm1, %v227_v28 }
  0x27   : > { %1095 = vmatmul.mubr.msk.f32.gmra.mrb[10].mxu0 %vm238_vm1, %v212_v29  ;;  %1119 = vmatmul.mubr.msk.f32.gmra.mrb[10].mxu1 %vm238_vm1, %v228_v30 }
  0x28   : > { %1097 = vmatprep.mubr.msk.f32.mxu0 %vm238_vm1, %v213_v31  ;;  %1121 = vmatprep.mubr.msk.f32.mxu1 %vm238_vm1, %v229_v32 }
  0x2b   : > { %1098 = vmatmul.mubr.msk.f32.gmra.mrb[12].mxu0 %vm238_vm1, %v214_v33  ;;  %1122 = vmatmul.mubr.msk.f32.gmra.mrb[12].mxu1 %vm238_vm1, %v230_v34 }
  0x2c   : > { %1100 = vmatprep.mubr.msk.f32.mxu0 %vm238_vm1, %v215_v35  ;;  %1124 = vmatprep.mubr.msk.f32.mxu1 %vm238_vm1, %v231_v36 }
  0x2f   : > { %1101 = vmatmul.mubr.msk.f32.gmra.mrb[14].mxu0 %vm238_vm1, %v216_v37  ;;  %1125 = vmatmul.mubr.msk.f32.gmra.mrb[14].mxu1 %vm238_vm1, %v232_v38 }
  0xe6   : > { %v1081_v40 = vpop.f32.mrb[0].mxu0  ;;  %v1105_v42 = vpop.f32.mrb[0].mxu1 }
  0xe7   : > { %v572_v43 = vmul.f32 %v1081_v40, %v1414_v39  ;;  %v588_v44 = vmul.f32 %v1105_v42, %v1414_v39  ;;  %v405_v45 = vpop.f32.mrb[1].mxu0  ;;  %v485_v46 = vpop.f32.mrb[1].mxu1 }
  0xe8   : > { %v571_v47 = vmul.f32 %v1414_v39, %v405_v45  ;;  %v587_v48 = vmul.f32 %v1414_v39, %v485_v46 }
  0xe9   : > { %v1426_v49 = vadd.f32 %v1419_v41, %v572_v43  ;;  %v1429_v50 = vadd.f32 %v1419_v41, %v588_v44 }
  0xea   : > { %v1432_v51 = vadd.f32 %v1419_v41, %v571_v47  ;;  %v1435_v52 = vadd.f32 %v1419_v41, %v587_v48  ;;  %v1084_v53 = vpop.f32.mrb[2].mxu0  ;;  %v1108_v54 = vpop.f32.mrb[2].mxu1 }
  0xeb   : > { %v999_v55 = vmul.f32 -1.442695, %v1426_v49  ;;  %v1015_v56 = vmul.f32 -1.442695, %v1429_v50  ;;  %v574_v57 = vmul.f32 %v1084_v53, %v1414_v39  ;;  %v590_v58 = vmul.f32 %v1108_v54, %v1414_v39  ;;  %v415_v59 = vpop.f32.mrb[3].mxu0  ;;  %v495_v60 = vpop.f32.mrb[3].mxu1 }
  0xec   : > { %v998_v61 = vmul.f32 -1.442695, %v1432_v51  ;;  %v1014_v62 = vmul.f32 -1.442695, %v1435_v52  ;;  %v573_v63 = vmul.f32 %v1414_v39, %v415_v59  ;;  %v589_v0 = vmul.f32 %v1414_v39, %v495_v60 }
  0xed   : > { %1149 = vpow2.f32 %v999_v55  ;;  %v1446_v1 = vadd.f32 %v1419_v41, %v574_v57  ;;  %v1449_v2 = vadd.f32 %v1419_v41, %v590_v58 }
  0xee   : > { %1151 = vpow2.f32 %v1015_v56  ;;  %v1452_v3 = vadd.f32 %v1419_v41, %v573_v63  ;;  %v1455_v4 = vadd.f32 %v1419_v41, %v589_v0  ;;  %v1087_v5 = vpop.f32.mrb[4].mxu0  ;;  %v1111_v6 = vpop.f32.mrb[4].mxu1 }
  0xef   : > { %1153 = vpow2.f32 %v998_v61  ;;  %v1001_v7 = vmul.f32 -1.442695, %v1446_v1  ;;  %v1017_v8 = vmul.f32 -1.442695, %v1449_v2  ;;  %v576_v9 = vmul.f32 %v1087_v5, %v1414_v39  ;;  %v425_v10 = vpop.f32.mrb[5].mxu0  ;;  %v505_v11 = vpop.f32.mrb[5].mxu1 }
  0xf0   : > { %1155 = vpow2.f32 %v1014_v62  ;;  %v1000_v12 = vmul.f32 -1.442695, %v1452_v3  ;;  %v1016_v13 = vmul.f32 -1.442695, %v1455_v4  ;;  %v592_v14 = vmul.f32 %v1111_v6, %v1414_v39 }
  0xf1   : > { %1157 = vpow2.f32 %v1001_v7  ;;  %v1464_v15 = vadd.f32 %v1419_v41, %v576_v9  ;;  %v575_v16 = vmul.f32 %v1414_v39, %v425_v10  ;;  %v591_v17 = vmul.f32 %v1414_v39, %v505_v11 }
  0xf2   : > { %1159 = vpow2.f32 %v1017_v8  ;;  %v1469_v18 = vadd.f32 %v1419_v41, %v592_v14  ;;  %v1090_v19 = vpop.f32.mrb[6].mxu0  ;;  %v1114_v20 = vpop.f32.mrb[6].mxu1 }
  0xf3   : > { %1161 = vpow2.f32 %v1000_v12  ;;  %v1003_v21 = vmul.f32 -1.442695, %v1464_v15  ;;  %v1473_v22 = vadd.f32 %v1419_v41, %v575_v16  ;;  %v1476_v23 = vadd.f32 %v1419_v41, %v591_v17  ;;  %v435_v24 = vpop.f32.mrb[7].mxu0  ;;  %v515_v25 = vpop.f32.mrb[7].mxu1 }
  0xf4   : > { %1163 = vpow2.f32 %v1016_v13  ;;  %v1019_v26 = vmul.f32 -1.442695, %v1469_v18  ;;  %v578_v29 = vmul.f32 %v1090_v19, %v1414_v39  ;;  %v594_v33 = vmul.f32 %v1114_v20, %v1414_v39 }
  0xf5   : > { %1165 = vpow2.f32 %v1003_v21  ;;  %v1002_v27 = vmul.f32 -1.442695, %v1473_v22  ;;  %v1018_v28 = vmul.f32 -1.442695, %v1476_v23  ;;  %v577_v42 = vmul.f32 %v1414_v39, %v435_v24 }
  0xf6   : > { %1167 = vpow2.f32 %v1019_v26  ;;  %v1093_v30 = vpop.f32.mrb[8].mxu0  ;;  %v1117_v31 = vpop.f32.mrb[8].mxu1  ;;  %v1485_v45 = vadd.f32 %v1419_v41, %v578_v29  ;;  %v1488_v54 = vadd.f32 %v1419_v41, %v594_v33  ;;  %v593_v55 = vmul.f32 %v1414_v39, %v515_v25 }
  0xf7   : > { %v1150_v32 = vpop.eup %1149  ;;  %1169 = vpow2.f32 %v1002_v27  ;;  %v445_v34 = vpop.f32.mrb[9].mxu0  ;;  %v580_v59 = vmul.f32 %v1093_v30, %v1414_v39  ;;  %v1493_v63 = vadd.f32 %v1419_v41, %v577_v42  ;;  %v596_v7 = vmul.f32 %v1117_v31, %v1414_v39 }
  0xf8   : > { %v525_v35 = vpop.f32.mrb[9].mxu1  ;;  %v1152_v36 = vpop.eup %1151  ;;  %v739_v37 = vadd.f32 1.0, %v1150_v32  ;;  %1171 = vpow2.f32 %v1018_v28  ;;  %v1005_v6 = vmul.f32 -1.442695, %v1485_v45  ;;  %v1021_v12 = vmul.f32 -1.442695, %v1488_v54 }
  0xf9   : > { %v1154_v38 = vpop.eup %1153  ;;  %v755_v40 = vadd.f32 1.0, %v1152_v36  ;;  %v1501_v13 = vadd.f32 %v1419_v41, %v593_v55  ;;  %v1508_v20 = vadd.f32 %v1419_v41, %v580_v59  ;;  %v579_v21 = vmul.f32 %v1414_v39, %v445_v34 }
  0xfa   : > { %v1156_v43 = vpop.eup %1155  ;;  %1173 = vrcp.f32 %v739_v37  ;;  %v738_v44 = vadd.f32 1.0, %v1154_v38  ;;  %v1096_v46 = vpop.f32.mrb[10].mxu0  ;;  %v1004_v26 = vmul.f32 -1.442695, %v1493_v63  ;;  %v595_v27 = vmul.f32 %v1414_v39, %v525_v35 }
  0xfb   : > { %v1120_v47 = vpop.f32.mrb[10].mxu1  ;;  %v1158_v48 = vpop.eup %1157  ;;  %1175 = vrcp.f32 %v755_v40  ;;  %v754_v53 = vadd.f32 1.0, %v1156_v43  ;;  %v1514_v30 = vadd.f32 %v1419_v41, %v596_v7  ;;  %v582_v31 = vmul.f32 %v1096_v46, %v1414_v39 }
  0xfc   : > { %v455_v56 = vpop.f32.mrb[11].mxu0  ;;  %v1160_v57 = vpop.eup %1159  ;;  %1177 = vrcp.f32 %v738_v44  ;;  %v741_v58 = vadd.f32 1.0, %v1158_v48  ;;  %v1020_v36 = vmul.f32 -1.442695, %v1501_v13  ;;  %v598_v37 = vmul.f32 %v1120_v47, %v1414_v39 }
  0xfd   : > { %v535_v60 = vpop.f32.mrb[11].mxu1  ;;  %v1162_v61 = vpop.eup %1161  ;;  %1179 = vrcp.f32 %v754_v53  ;;  %v757_v62 = vadd.f32 1.0, %v1160_v57  ;;  %v1007_v42 = vmul.f32 -1.442695, %v1508_v20  ;;  %v1536_v43 = vadd.f32 %v1419_v41, %v579_v21 }
  0xfe   : > { %v1164_v0 = vpop.eup %1163  ;;  %1181 = vrcp.f32 %v741_v58  ;;  %v740_v5 = vadd.f32 1.0, %v1162_v61  ;;  %v1099_v8 = vpop.f32.mrb[12].mxu0  ;;  %v581_v44 = vmul.f32 %v1414_v39, %v455_v56  ;;  %v1541_v48 = vadd.f32 %v1419_v41, %v595_v27 }
  0xff   : > { %v1497_v9 = vpop.f32.mrb[12].mxu1  ;;  %v1166_v10 = vpop.eup %1165  ;;  %1183 = vrcp.f32 %v757_v62  ;;  %v756_v11 = vadd.f32 1.0, %v1164_v0  ;;  %v597_v53 = vmul.f32 %v1414_v39, %v535_v60  ;;  %v1546_v58 = vadd.f32 %v1419_v41, %v582_v31 }
 0x100   : > { %v1503_v14 = vpop.f32.mrb[13].mxu0  ;;  %v1505_v16 = vpop.f32.mrb[13].mxu1  ;;  %1185 = vrcp.f32 %v740_v5  ;;  %v743_v19 = vadd.f32 1.0, %v1166_v10  ;;  %v584_v56 = vmul.f32 %v1099_v8, %v1414_v39  ;;  %v1023_v61 = vmul.f32 -1.442695, %v1514_v30 }
 0x101   : > { %v1168_v17 = vpop.eup %1167  ;;  %1187 = vrcp.f32 %v756_v11  ;;  %v1553_v60 = vadd.f32 %v1419_v41, %v598_v37  ;;  %v1006_v0 = vmul.f32 -1.442695, %v1536_v43  ;;  %v1559_v5 = vadd.f32 %v1419_v41, %v581_v44 }
 0x102   : > { %v1170_v24 = vpop.eup %1169  ;;  %v759_v25 = vadd.f32 1.0, %v1168_v17  ;;  %1189 = vrcp.f32 %v743_v19  ;;  %v1517_v32 = vpop.f32.mrb[14].mxu0  ;;  %v1022_v7 = vmul.f32 -1.442695, %v1541_v48  ;;  %v1565_v8 = vadd.f32 %v1419_v41, %v597_v53 }
 0x103   : > { %v1172_v28 = vpop.eup %1171  ;;  %v742_v29 = vadd.f32 1.0, %v1170_v24  ;;  %v1519_v33 = vpop.f32.mrb[14].mxu1  ;;  %v1009_v11 = vmul.f32 -1.442695, %v1546_v58  ;;  %v1025_v19 = vmul.f32 -1.442695, %v1553_v60 }
 0x104   : > { %1191 = vrcp.f32 %v759_v25  ;;  %v758_v34 = vadd.f32 1.0, %v1172_v28  ;;  %v1523_v38 = vpop.f32.mrb[15].mxu0  ;;  %v1525_v35 = vpop.f32.mrb[15].mxu1 }
 0x105   : > { %v1174_v40 = vpop.eup %1173  ;;  %1193 = vrcp.f32 %v742_v29 }
 0x106   : > { %v1176_v46 = vpop.eup %1175  ;;  %v835_v47 = vmul.f32 %v1174_v40, %v1426_v49  ;;  %1195 = vrcp.f32 %v758_v34 }
 0x107   : > { %v1178_v55 = vpop.eup %1177  ;;  %v851_v57 = vmul.f32 %v1176_v46, %v1429_v50  ;;  %1197 = vpow2.f32 %v1005_v6 }
 0x108   : > { %v1180_v59 = vpop.eup %1179  ;;  %867 = vst [vmem:[%s1532_s12 + $0x8] sm:$0xff] %v835_v47  ;;  %v834_v49 = vmul.f32 %v1178_v55, %v1432_v51  ;;  %1199 = vpow2.f32 %v1021_v12  ;;  %v1571_v12 = vadd.f32 %v1419_v41, %v584_v56  ;;  %v600_v47 = vmul.f32 %v1497_v9, %v1414_v39 }
 0x109   : > { %v1182_v62 = vpop.eup %1181  ;;  %883 = vst [vmem:[%s1532_s12 + $0x88] sm:$0xff] %v851_v57  ;;  %v850_v50 = vmul.f32 %v1180_v59, %v1435_v52  ;;  %1201 = vpow2.f32 %v1004_v26  ;;  %v583_v55 = vmul.f32 %v1414_v39, %v1503_v14  ;;  %v599_v59 = vmul.f32 %v1414_v39, %v1505_v16 }
 0x10a   : > { %v1184_v6 = vpop.eup %1183  ;;  %866 = vst [vmem:[%s1532_s12] sm:$0xff] %v834_v49  ;;  %v837_v51 = vmul.f32 %v1182_v62, %v1446_v1  ;;  %1203 = vpow2.f32 %v1020_v36  ;;  %v586_v62 = vmul.f32 %v1517_v32, %v1414_v39  ;;  %v602_v14 = vmul.f32 %v1519_v33, %v1414_v39 }
 0x10b   : > { %v1186_v10 = vpop.eup %1185  ;;  %882 = vst [vmem:[%s1532_s12 + $0x80] sm:$0xff] %v850_v50  ;;  %v853_v52 = vmul.f32 %v1184_v6, %v1449_v2  ;;  %1205 = vpow2.f32 %v1007_v42  ;;  %v1008_v2 = vmul.f32 -1.442695, %v1559_v5  ;;  %v1605_v16 = vadd.f32 %v1419_v41, %v583_v55 }
 0x10c   : > { %v1188_v17 = vpop.eup %1187  ;;  %869 = vst [vmem:[%s1532_s12 + $0x18] sm:$0xff] %v837_v51  ;;  %v836_v1 = vmul.f32 %v1186_v10, %v1452_v3  ;;  %1207 = vpow2.f32 %v1023_v61  ;;  %v1024_v3 = vmul.f32 -1.442695, %v1565_v8 }
 0x10d   : > { %v1190_v21 = vpop.eup %1189  ;;  %885 = vst [vmem:[%s1532_s12 + $0x98] sm:$0xff] %v853_v52  ;;  %v852_v24 = vmul.f32 %v1188_v17, %v1455_v4  ;;  %1209 = vpow2.f32 %v1006_v0  ;;  %v1011_v4 = vmul.f32 -1.442695, %v1571_v12  ;;  %v1600_v0 = vadd.f32 %v1419_v41, %v600_v47 }
 0x10e   : > { %v1192_v25 = vpop.eup %1191  ;;  %868 = vst [vmem:[%s1532_s12 + $0x10] sm:$0xff] %v836_v1  ;;  %v839_v26 = vmul.f32 %v1190_v21, %v1464_v15  ;;  %1211 = vpow2.f32 %v1022_v7  ;;  %v585_v7 = vmul.f32 %v1414_v39, %v1523_v38  ;;  %v1610_v52 = vadd.f32 %v1419_v41, %v599_v59 }
 0x10f   : > { %v1194_v27 = vpop.eup %1193  ;;  %884 = vst [vmem:[%s1532_s12 + $0x90] sm:$0xff] %v852_v24  ;;  %v855_v28 = vmul.f32 %v1192_v25, %v1469_v18  ;;  %1213 = vpow2.f32 %v1009_v11  ;;  %v601_v11 = vmul.f32 %v1414_v39, %v1525_v35  ;;  %v1615_v1 = vadd.f32 %v1419_v41, %v586_v62 }
 0x110   : > { %v1196_v29 = vpop.eup %1195  ;;  %871 = vst [vmem:[%s1532_s12 + $0x28] sm:$0xff] %v839_v26  ;;  %v838_v31 = vmul.f32 %v1194_v27, %v1473_v22  ;;  %1215 = vpow2.f32 %v1025_v19  ;;  %v1027_v38 = vmul.f32 -1.442695, %v1600_v0  ;;  %v1619_v24 = vadd.f32 %v1419_v41, %v602_v14 }
 0x111   : > { %v1198_v34 = vpop.eup %1197  ;;  %887 = vst [vmem:[%s1532_s12 + $0xa8] sm:$0xff] %v855_v28  ;;  %v854_v15 = vmul.f32 %v1196_v29, %v1476_v23  ;;  %1217 = vpow2.f32 %v1008_v2  ;;  %v1010_v39 = vmul.f32 -1.442695, %v1605_v16  ;;  %v1623_v35 = vadd.f32 %v1419_v41, %v585_v7 }
 0x112   : > { %v1200_v36 = vpop.eup %1199  ;;  %870 = vst [vmem:[%s1532_s12 + $0x20] sm:$0xff] %v838_v31  ;;  %v745_v37 = vadd.f32 1.0, %v1198_v34  ;;  %1219 = vpow2.f32 %v1024_v3  ;;  %v1026_v27 = vmul.f32 -1.442695, %v1610_v52  ;;  %v1628_v28 = vadd.f32 %v1419_v41, %v601_v11 }
 0x113   : > { %v1202_v40 = vpop.eup %1201  ;;  %886 = vst [vmem:[%s1532_s12 + $0xa0] sm:$0xff] %v854_v15  ;;  %v761_v18 = vadd.f32 1.0, %v1200_v36  ;;  %1221 = vpow2.f32 %v1011_v4  ;;  %v1013_v31 = vmul.f32 -1.442695, %v1615_v1 }
 0x114   : > { %v1204_v42 = vpop.eup %1203  ;;  %1223 = vrcp.f32 %v745_v37  ;;  %v744_v44 = vadd.f32 1.0, %v1202_v40 }
 0x115   : > { %v1206_v46 = vpop.eup %1205  ;;  %1225 = vrcp.f32 %v761_v18  ;;  %v760_v22 = vadd.f32 1.0, %v1204_v42 }
 0x116   : > { %v1208_v53 = vpop.eup %1207  ;;  %1227 = vrcp.f32 %v744_v44  ;;  %v747_v23 = vadd.f32 1.0, %v1206_v46 }
 0x117   : > { %v1210_v57 = vpop.eup %1209  ;;  %1229 = vrcp.f32 %v760_v22  ;;  %v763_v56 = vadd.f32 1.0, %v1208_v53 }
 0x118   : > { %v1212_v49 = vpop.eup %1211  ;;  %1231 = vrcp.f32 %v747_v23  ;;  %v746_v61 = vadd.f32 1.0, %v1210_v57 }
 0x119   : > { %v1214_v50 = vpop.eup %1213  ;;  %1233 = vrcp.f32 %v763_v56  ;;  %v762_v9 = vadd.f32 1.0, %v1212_v49 }
 0x11a   : > { %v1216_v6 = vpop.eup %1215  ;;  %1235 = vrcp.f32 %v746_v61  ;;  %v749_v51 = vadd.f32 1.0, %v1214_v50 }
 0x11b   : > { %v1218_v10 = vpop.eup %1217  ;;  %1237 = vrcp.f32 %v762_v9  ;;  %v765_v32 = vadd.f32 1.0, %v1216_v6 }
 0x11c   : > { %v1220_v17 = vpop.eup %1219  ;;  %1239 = vrcp.f32 %v749_v51  ;;  %v748_v33 = vadd.f32 1.0, %v1218_v10 }
 0x11d   : > { %v1222_v19 = vpop.eup %1221  ;;  %1241 = vrcp.f32 %v765_v32  ;;  %v764_v21 = vadd.f32 1.0, %v1220_v17 }
 0x11e   : > { %v1224_v2 = vpop.eup %1223  ;;  %1243 = vrcp.f32 %v748_v33  ;;  %v751_v25 = vadd.f32 1.0, %v1222_v19 }
 0x11f   : > { %v1226_v26 = vpop.eup %1225  ;;  %v841_v3 = vmul.f32 %v1224_v2, %v1485_v45  ;;  %1245 = vrcp.f32 %v764_v21  ;;  %v1029_v45 = vmul.f32 -1.442695, %v1619_v24 }
 0x120   : > { %v1228_v4 = vpop.eup %1227  ;;  %v857_v29 = vmul.f32 %v1226_v26, %v1488_v54  ;;  %1247 = vrcp.f32 %v751_v25  ;;  %v1012_v54 = vmul.f32 -1.442695, %v1623_v35 }
 0x121   : > { %v1230_v34 = vpop.eup %1229  ;;  %873 = vst [vmem:[%s1532_s12 + $0x38] sm:$0xff] %v841_v3  ;;  %v840_v15 = vmul.f32 %v1228_v4, %v1493_v63  ;;  %1249 = vpow2.f32 %v1027_v38  ;;  %v1028_v63 = vmul.f32 -1.442695, %v1628_v28 }
 0x122   : > { %v1232_v36 = vpop.eup %1231  ;;  %889 = vst [vmem:[%s1532_s12 + $0xb8] sm:$0xff] %v857_v29  ;;  %v856_v41 = vmul.f32 %v1230_v34, %v1501_v13  ;;  %1251 = vpow2.f32 %v1010_v39 }
 0x123   : > { %v1234_v37 = vpop.eup %1233  ;;  %872 = vst [vmem:[%s1532_s12 + $0x30] sm:$0xff] %v840_v15  ;;  %v843_v40 = vmul.f32 %v1232_v36, %v1508_v20  ;;  %1253 = vpow2.f32 %v1026_v27 }
 0x124   : > { %v1236_v18 = vpop.eup %1235  ;;  %888 = vst [vmem:[%s1532_s12 + $0xb0] sm:$0xff] %v856_v41  ;;  %v859_v42 = vmul.f32 %v1234_v37, %v1514_v30  ;;  %1255 = vpow2.f32 %v1013_v31 }
 0x125   : > { %v1238_v44 = vpop.eup %1237  ;;  %875 = vst [vmem:[%s1532_s12 + $0x48] sm:$0xff] %v843_v40  ;;  %v842_v13 = vmul.f32 %v1236_v18, %v1536_v43  ;;  %1257 = vpow2.f32 %v1029_v45 }
 0x126   : > { %v1240_v46 = vpop.eup %1239  ;;  %891 = vst [vmem:[%s1532_s12 + $0xc8] sm:$0xff] %v859_v42  ;;  %v858_v20 = vmul.f32 %v1238_v44, %v1541_v48  ;;  %1259 = vpow2.f32 %v1012_v54 }
 0x127   : > { %v1242_v22 = vpop.eup %1241  ;;  %874 = vst [vmem:[%s1532_s12 + $0x40] sm:$0xff] %v842_v13  ;;  %v845_v47 = vmul.f32 %v1240_v46, %v1546_v58  ;;  %1261 = vpow2.f32 %v1028_v63 }
 0x128   : > { %v1244_v30 = vpop.eup %1243  ;;  %890 = vst [vmem:[%s1532_s12 + $0xc0] sm:$0xff] %v858_v20  ;;  %v861_v53 = vmul.f32 %v1242_v22, %v1553_v60 }
 0x129   : > { %v1246_v43 = vpop.eup %1245  ;;  %877 = vst [vmem:[%s1532_s12 + $0x58] sm:$0xff] %v845_v47  ;;  %v844_v23 = vmul.f32 %v1244_v30, %v1559_v5 }
 0x12a   : > { %v1248_v55 = vpop.eup %1247  ;;  %893 = vst [vmem:[%s1532_s12 + $0xd8] sm:$0xff] %v861_v53  ;;  %v860_v48 = vmul.f32 %v1246_v43, %v1565_v8 }
 0x12b   : > { %v1250_v57 = vpop.eup %1249  ;;  %876 = vst [vmem:[%s1532_s12 + $0x50] sm:$0xff] %v844_v23  ;;  %v847_v56 = vmul.f32 %v1248_v55, %v1571_v12 }
 0x12c   : > { %v1252_v59 = vpop.eup %1251  ;;  %892 = vst [vmem:[%s1532_s12 + $0xd0] sm:$0xff] %v860_v48  ;;  %v767_v58 = vadd.f32 1.0, %v1250_v57 }
 0x12d   : > { %v1254_v49 = vpop.eup %1253  ;;  %879 = vst [vmem:[%s1532_s12 + $0x68] sm:$0xff] %v847_v56  ;;  %v750_v61 = vadd.f32 1.0, %v1252_v59 }
 0x12e   : > { %v1256_v62 = vpop.eup %1255  ;;  %1263 = vrcp.f32 %v767_v58  ;;  %v766_v60 = vadd.f32 1.0, %v1254_v49 }
 0x12f   : > { %v1258_v50 = vpop.eup %1257  ;;  %1265 = vrcp.f32 %v750_v61  ;;  %v753_v5 = vadd.f32 1.0, %v1256_v62 }
 0x130   : > { %v1260_v9 = vpop.eup %1259  ;;  %1267 = vrcp.f32 %v766_v60  ;;  %v769_v8 = vadd.f32 1.0, %v1258_v50 }
 0x131   : > { %v1262_v14 = vpop.eup %1261  ;;  %1269 = vrcp.f32 %v753_v5  ;;  %v752_v12 = vadd.f32 1.0, %v1260_v9 }
 0x132   : > { %1271 = vrcp.f32 %v769_v8  ;;  %v768_v6 = vadd.f32 1.0, %v1262_v14 }
 0x133   : > { %1273 = vrcp.f32 %v752_v12 }
 0x134   : > { %1275 = vrcp.f32 %v768_v6 }
 0x138   : > { %v1264_v51 = vpop.eup %1263 }
 0x139   : > { %v1266_v7 = vpop.eup %1265  ;;  %v863_v10 = vmul.f32 %v1264_v51, %v1600_v0 }
 0x13a   : > { %v1268_v32 = vpop.eup %1267  ;;  %v846_v11 = vmul.f32 %v1266_v7, %v1605_v16 }
 0x13b   : > { %v1270_v17 = vpop.eup %1269  ;;  %895 = vst [vmem:[%s1532_s12 + $0xe8] sm:$0xff] %v863_v10  ;;  %v862_v33 = vmul.f32 %v1268_v32, %v1610_v52 }
 0x13c   : > { %v1272_v19 = vpop.eup %1271  ;;  %878 = vst [vmem:[%s1532_s12 + $0x60] sm:$0xff] %v846_v11  ;;  %v849_v21 = vmul.f32 %v1270_v17, %v1615_v1 }
 0x13d   : > { %v1274_v38 = vpop.eup %1273  ;;  %894 = vst [vmem:[%s1532_s12 + $0xe0] sm:$0xff] %v862_v33  ;;  %v865_v2 = vmul.f32 %v1272_v19, %v1619_v24 }
 0x13e   : > { %v1276_v25 = vpop.eup %1275  ;;  %881 = vst [vmem:[%s1532_s12 + $0x78] sm:$0xff] %v849_v21  ;;  %v848_v0 = vmul.f32 %v1274_v38, %v1623_v35 }
 0x13f   : > { %897 = vst [vmem:[%s1532_s12 + $0xf8] sm:$0xff] %v865_v2  ;;  %v864_v16 = vmul.f32 %v1276_v25, %v1628_v28 }
 0x140   : > { %880 = vst [vmem:[%s1532_s12 + $0x70] sm:$0xff] %v848_v0 }
 0x141   : > { %896 = vst [vmem:[%s1532_s12 + $0xf0] sm:$0xff] %v864_v16 }
 0x142 PF: > { %s14_s15 = sadd.s32 1, %s1283_s15  }
 0x143   : > { %p11_p4 = scmp.ge.s32.totalorder %s14_s15, 4  }
 0x145   :  { %13 = sbr.rel (!%p11_p4) target bundleno = 1 (0x1), region = 66 }

</bundles_post_ra>
